<compile_context>
chip_gen: v6e
topology: v6e:2x2x1
jax: 0.10.0
libtpu: 0.0.40
codegen_flags: <defaults>
</compile_context>

<pallas_src>
import functools

import jax
import jax.numpy as jnp
from jax.experimental import pallas as pl
from jax.experimental.pallas import tpu as pltpu


# ---------------------------------------------------------------------------
# Kernels
# ---------------------------------------------------------------------------
def _gap_single_kernel(x_ref, o_ref, *, inv_hw):
    """Single spatial step: x_ref (row_tile, hw) -> o_ref (row_tile, 1). No scratch needed."""
    s = jnp.sum(x_ref[...], axis=-1, keepdims=True, dtype=jnp.float32)
    o_ref[...] = (s * inv_hw).astype(o_ref.dtype)


def _gap_accum_kernel(x_ref, o_ref, acc_ref, *, inv_hw, valid_last):
    """Multi spatial step: accumulate partial row-sums in an f32 scratch.

    x_ref: (row_tile, hw_tile); o_ref: (row_tile, 1); acc_ref: f32 (row_tile, 1).
    valid_last: number of valid lanes in the final spatial block, or None if hw_tile
    divides H*W exactly (no masking needed).
    """
    k = pl.program_id(1)
    nk = pl.num_programs(1)

    @pl.when(k == 0)
    def _init():
        acc_ref[...] = jnp.zeros_like(acc_ref)

    x = x_ref[...]
    if valid_last is not None:
        # Final spatial block is partial: out-of-range lanes hold stale VMEM data -> mask.
        col = jax.lax.broadcasted_iota(jnp.int32, x.shape, 1)
        limit = jnp.where(k == nk - 1, valid_last, x.shape[1])
        x = jnp.where(col < limit, x, 0)

    acc_ref[...] += jnp.sum(x, axis=-1, keepdims=True, dtype=jnp.float32)

    @pl.when(k == nk - 1)
    def _finalize():
        o_ref[...] = (acc_ref[...] * inv_hw).astype(o_ref.dtype)


# ---------------------------------------------------------------------------
# Tiling policy
# ---------------------------------------------------------------------------
def _round_up(x, m):
    return ((x + m - 1) // m) * m


def _round_down(x, m):
    return (x // m) * m


_MAX_ROW_TILE = 8192  # sane upper cap on rows per block


def _vmem_capacity_bytes():
    try:
        return int(pltpu.get_tpu_info().vmem_capacity_bytes)
    except Exception:
        return 64 << 20  # conservative (v7x-sized) fallback


def _choose_tiles(rows, hw, itemsize, budget):
    """Pick (row_tile, hw_tile, sublane_align) so one lane/sublane-padded input block
    stays near `budget` bytes of VMEM."""
    sub = {4: 8, 2: 16, 1: 32}.get(itemsize, 8)  # packed-sublane alignment per dtype
    hw_pad = _round_up(hw, 128)
    # Cap so there are >= 2 row steps whenever possible: shards the "parallel" row axis
    # across v7x's two TensorCores; one extra tiny step is harmless on 1-TC parts.
    two_step_cap = _round_up(pl.cdiv(rows, 2), sub)

    if sub * hw_pad * itemsize <= budget:
        # Common GAP case: keep the full spatial extent per block (fully contiguous DMA),
        # and grow the row tile to fill the byte budget.
        hw_tile = hw
        row_tile = max(sub, _round_down(budget // (hw_pad * itemsize), sub))
        row_tile = min(row_tile, _MAX_ROW_TILE, two_step_cap)
        if row_tile >= rows:
            row_tile = rows
    else:
        # Huge spatial extent: minimal row tile, split lanes into large 128-aligned chunks
        # (final partial chunk is masked in-kernel). Per-row DMA chunks stay >= budget/sub
        # bytes, never the 512 B strided chunks of a 128-lane fallback.
        row_tile = min(rows, sub)
        hw_tile = max(128, _round_down(budget // (max(row_tile, sub) * itemsize), 128))
        if hw_tile >= hw:  # pathological tiny budgets: fall back to the full (legal) extent
            hw_tile = hw
    return row_tile, hw_tile, sub


# ---------------------------------------------------------------------------
# Wrapper
# ---------------------------------------------------------------------------
def global_avg_pool_2d(x, *, target_block_bytes=None):
    """GlobalAvgPool2d: mean over the last two spatial dims, keepdim=True."""
    n, c, h, w = x.shape
    rows, hw = n * c, h * w
    itemsize = jnp.dtype(x.dtype).itemsize

    # Generation-aware VMEM budget: limit cap leaves 16 MiB headroom under physical VMEM
    # (=> <= 48 MiB on v7x's 64 MiB parts, plenty of room on 128 MiB v5e/v6e parts).
    vmem_cap = _vmem_capacity_bytes()
    vmem_limit_cap = max(32 << 20, vmem_cap - (16 << 20))
    max_budget = max(1 << 20, (vmem_limit_cap - (4 << 20)) // 3)
    if target_block_bytes is None:
        target_block_bytes = min(16 << 20, max_budget)
    budget = max(4 << 10, min(int(target_block_bytes), max_budget))

    row_tile, hw_tile, sub = _choose_tiles(rows, hw, itemsize, budget)
    row_steps = pl.cdiv(rows, row_tile)
    k_steps = pl.cdiv(hw, hw_tile)
    valid_last = hw - (k_steps - 1) * hw_tile  # valid lanes in the final spatial block

    x2d = x.reshape(rows, hw)  # free reshape for contiguous NCHW
    inv_hw = float(1.0 / hw)

    # Honest VMEM accounting: every block is lane(128)- and sublane-padded in VMEM.
    in_block = _round_up(row_tile, sub) * _round_up(hw_tile, 128) * itemsize
    out_block = 2 * _round_up(row_tile, 8) * 128 * itemsize          # double-buffered output
    acc_block = (_round_up(row_tile, 8) * 128 * 4) if k_steps > 1 else 0  # lane-padded f32 acc
    slack = 2 << 20                                                   # Mosaic internal scratch

    total_steps = row_steps * k_steps
    use_buffered = (
        hasattr(pl, "Buffered")
        and in_block <= (8 << 20)
        and total_steps >= 3
        and 3 * in_block + out_block + acc_block + slack <= vmem_limit_cap
    )
    num_buffers = 3 if use_buffered else 2
    vmem_needed = num_buffers * in_block + out_block + acc_block + slack
    vmem_limit = int(min(vmem_limit_cap, max(vmem_needed, 32 << 20)))

    cost = pl.CostEstimate(
        flops=rows * hw,
        transcendentals=0,
        bytes_accessed=rows * hw * itemsize + rows * itemsize,
    )

    def build(buffered):
        in_kwargs = {"pipeline_mode": pl.Buffered(3)} if buffered else {}
        if k_steps == 1:
            kernel = functools.partial(_gap_single_kernel, inv_hw=inv_hw)
            grid_spec = pltpu.PrefetchScalarGridSpec(
                num_scalar_prefetch=0,
                grid=(row_steps,),
                in_specs=[pl.BlockSpec((row_tile, hw_tile), lambda i: (i, 0), **in_kwargs)],
                out_specs=pl.BlockSpec((row_tile, 1), lambda i: (i, 0)),
            )
            semantics = ("parallel",)
        else:
            kernel = functools.partial(
                _gap_accum_kernel,
                inv_hw=inv_hw,
                valid_last=(valid_last if valid_last != hw_tile else None),
            )
            grid_spec = pltpu.PrefetchScalarGridSpec(
                num_scalar_prefetch=0,
                grid=(row_steps, k_steps),
                in_specs=[pl.BlockSpec((row_tile, hw_tile), lambda i, k: (i, k), **in_kwargs)],
                out_specs=pl.BlockSpec((row_tile, 1), lambda i, k: (i, 0)),
                scratch_shapes=[pltpu.VMEM((row_tile, 1), jnp.float32)],
            )
            semantics = ("parallel", "arbitrary")
        return pl.pallas_call(
            kernel,
            out_shape=jax.ShapeDtypeStruct((rows, 1), x.dtype),
            grid_spec=grid_spec,
            compiler_params=pltpu.CompilerParams(
                dimension_semantics=semantics, vmem_limit_bytes=vmem_limit),
            cost_estimate=cost,
        )

    if use_buffered:
        try:
            out2d = build(True)(x2d)
        except Exception:
            out2d = build(False)(x2d)  # safe fallback if 3-deep buffering is rejected
    else:
        out2d = build(False)(x2d)

    return out2d.reshape(n, c, 1, 1)


# ---------------------------------------------------------------------------
# Self-test
# ---------------------------------------------------------------------------
if __name__ == "__main__":
    key = jax.random.PRNGKey(0)

    # Primary small shape consistent with the module (single-step path).
    x = jax.random.normal(key, (2, 4, 16, 16), dtype=jnp.float32)
    out = global_avg_pool_2d(x)
    jax.block_until_ready(out)
    ref = jnp.mean(x, axis=(2, 3), keepdims=True)
    assert out.shape == (2, 4, 1, 1), out.shape
    assert jnp.allclose(out, ref, atol=1e-5, rtol=1e-5)

    # Multiple "parallel" row steps (>= 2 row steps for 2-TC sharding), full-hw blocks.
    x2 = jax.random.normal(jax.random.PRNGKey(1), (2, 512, 16, 16), dtype=jnp.float32)
    out2 = global_avg_pool_2d(x2)
    ref2 = jnp.mean(x2, axis=(2, 3), keepdims=True)
    assert jnp.allclose(out2, ref2, atol=1e-5, rtol=1e-5)

    # Spatial-split accumulator path, hw_tile divides H*W exactly (no mask), Buffered(3).
    x3 = jax.random.normal(jax.random.PRNGKey(2), (2, 32, 64, 64), dtype=jnp.float32)
    out3 = global_avg_pool_2d(x3, target_block_bytes=64 << 10)
    ref3 = jnp.mean(x3, axis=(2, 3), keepdims=True)
    assert jnp.allclose(out3, ref3, atol=1e-5, rtol=1e-5)

    # Spatial-split path with a masked final partial chunk (hw not a multiple of hw_tile).
    x4 = jax.random.normal(jax.random.PRNGKey(3), (2, 32, 40, 40), dtype=jnp.float32)
    out4 = global_avg_pool_2d(x4, target_block_bytes=32 << 10)
    ref4 = jnp.mean(x4, axis=(2, 3), keepdims=True)
    assert jnp.allclose(out4, ref4, atol=1e-5, rtol=1e-5)

    # bf16 input: in-kernel f32 accumulation; compare against f32 reference, loose tol.
    xb = jax.random.normal(jax.random.PRNGKey(4), (2, 8, 16, 16), dtype=jnp.float32).astype(jnp.bfloat16)
    outb = global_avg_pool_2d(xb)
    refb = jnp.mean(xb.astype(jnp.float32), axis=(2, 3), keepdims=True).astype(jnp.bfloat16)
    assert jnp.allclose(outb.astype(jnp.float32), refb.astype(jnp.float32), atol=1e-2, rtol=1e-2)

    jax.block_until_ready((out, out2, out3, out4, outb))
    print("KERNEL_OK")
</pallas_src>

<mosaic_0001>
module attributes {stable_mosaic.version = 11 : i64} {
  func.func @_gap_single_kernel(%arg0: i32, %arg1: memref<8x256xf32, #tpu.memory_space<vmem>>, %arg2: memref<8x1xf32, #tpu.memory_space<vmem>>) attributes {dimension_semantics = [#tpu.dimension_semantics<parallel>], iteration_bounds = array<i64: 1>, scalar_prefetch = 0 : i64, scratch_operands = 0 : i64, tpu.core_type = #tpu.core_type<tc>, window_params = [{transform_indices = @transform_0, window_bounds = array<i64: 8, 256>}, {transform_indices = @transform_1, window_bounds = array<i64: 8, 1>}]} {
    %c0 = arith.constant 0 : index
    %c0_0 = arith.constant 0 : index
    %0 = vector.load %arg1[%c0, %c0_0] : memref<8x256xf32, #tpu.memory_space<vmem>>, vector<8x256xf32>
    %cst = arith.constant dense<0.000000e+00> : vector<8xf32>
    %1 = vector.multi_reduction <add>, %0, %cst [1] : vector<8x256xf32> to vector<8xf32>
    %2 = vector.shape_cast %1 : vector<8xf32> to vector<8x1xf32>
    %cst_1 = arith.constant 3.906250e-03 : f32
    %3 = vector.broadcast %cst_1 : f32 to vector<8x1xf32>
    %4 = arith.mulf %2, %3 : vector<8x1xf32>
    %c0_2 = arith.constant 0 : index
    %c0_3 = arith.constant 0 : index
    %5 = vector.load %arg2[%c0_2, %c0_3] : memref<8x1xf32, #tpu.memory_space<vmem>>, vector<8x1xf32>
    tpu.vector_store %arg2[%c0_2, %c0_3], %4 {strides = array<i32>} : memref<8x1xf32, #tpu.memory_space<vmem>>, vector<8x1xf32>,
    return
  }
  func.func @transform_0(%arg0: i32) -> (i32, i32) {
    %c0_i32 = arith.constant 0 : i32
    %c0_i32_0 = arith.constant 0 : i32
    return %arg0, %c0_i32 : i32, i32
  }
  func.func @transform_1(%arg0: i32) -> (i32, i32) {
    %c0_i32 = arith.constant 0 : i32
    %c0_i32_0 = arith.constant 0 : i32
    return %arg0, %c0_i32 : i32, i32
  }
}

</mosaic_0001>

<bundles_post_ra>
// kernel: tpu_custom_call.1
= control target key start
LH: loop header
LB: loop body
LE: loop exit
PB: predicated region body
PF: predicated region fallthrough
CT: control target
= control target key end

     0   :  { %6 = vsyncpa [#allocation3], 0  ;;  %s56_s6 = smov [#allocation2]   ;;  %s73_s0 = inlined_call_operand.hbm [shape: f32[8,256], index: 0, kind: input, shape index: {}]   ;;  %s74_s1 = inlined_call_operand.vmem [shape: f32[8,1], index: 1, kind: output, shape index: {}]  }
   0x1   :  { %s13_s7 = sshll.u32 %s56_s6, 4  ;;  %s14_s7 = int_to_ptr.vmem [resolvable:$true] %s13_s7 }
   0x2   :  { %s42_s8 = scalar_lea.vmem %s14_s7, 256  ;;  %p47_p1 = scmp.lt.s32.totalorder %s14_s7, %s14_s7 }
   0x3   :  { %p43_p0 = scmp.ne.s32.totalorder %s14_s7, %s42_s8  ;;  %p48_p2 = scmp.lt.s32.totalorder %s42_s8, %s42_s8 }
   0x5   :  { %p49_p3 = por %p48_p2, %p47_p1 }
   0x7   :  { %p50_p4 = pnand %p49_p3, %p43_p0 }
   0x9   :  { %53 = shalt.err (!%p50_p4)
}
   0xa   :  { %16 = dma.hbm_to_vmem [thread:$0]  %s73_s0, 256, %s14_s7, [#allocation3]  }
   0xb   :  { %54 = dma.done.wait [#allocation3], 256  }
   0xc   :  { %55 = vsyncadd [#allocation3], 4294967040  ;;  %v20_v0 = vld [vmem:[#allocation2] sm:$0xff]  ;;  %v21_v1 = vld [vmem:[#allocation2 + $0x8] sm:$0xff]  ;;  %vm26_vm0 = vcmask 7168  }
   0xd   :  { %v22_v2 = vadd.f32 %v21_v1, %v20_v0 }
   0xf   :  { %23 = vadd.xlane.f32.xlu0 %v22_v2 }
  0x98   :  { %v24_v3 = vpop.xlane.xlu0 %23 }
  0x99   :  { %v25_v4 = vmul.f32 0.00390625, %v24_v3 }
  0x9b   :  { %27 = vst.msk [vmem:[%s74_s1] sm:$0xff] %vm26_vm0, %v25_v4 }
  0x9c   :  { %32 = vsyncpa [#allocation3], 1 }

</bundles_post_ra>
